<compile_context>
chip_gen: v7x
topology: tpu7x:2x2x1
jax: 0.10.0
libtpu: 0.0.40
codegen_flags: <defaults>
</compile_context>

<pallas_src>
import jax
import jax.numpy as jnp
from jax.experimental import pallas as pl
from jax.experimental.pallas import tpu as pltpu

IGNORE_INDEX = -100


def _wce_kernel(logits_ref, labels_ref, w_ref, out_ref):
    """Per-row weighted NLL for one (row_tile, V) tile of logits."""
    logits = logits_ref[...].astype(jnp.float32)              # (TR, V) f32 compute
    labels = labels_ref[...]                                   # (TR, 1) int32

    # one-hot of the label via iota compare (label gather without jnp.take);
    # ignored rows (label=-100) and padded rows produce an all-zero one-hot.
    iota = jax.lax.broadcasted_iota(jnp.int32, logits.shape, 1)
    onehot = (iota == labels).astype(jnp.float32)              # (TR, V)

    # numerically stable log-sum-exp per row
    m = jnp.max(logits, axis=-1, keepdims=True)                # (TR, 1)
    lse = m + jnp.log(jnp.sum(jnp.exp(logits - m), axis=-1, keepdims=True))

    correct = jnp.sum(logits * onehot, axis=-1, keepdims=True)  # x_i[y_i]

    # per-row weight already includes ignore/pad masking (0 for ignored rows)
    out_ref[...] = (w_ref[...] * (lse - correct)).astype(out_ref.dtype)


def _choose_row_tile(N, V, dtype_bytes, budget_bytes, *, cap=1024):
    """Largest row tile whose double-buffered logits tile fits the budget."""
    per_row = max(1, V * dtype_bytes)
    rows = budget_bytes // (2 * per_row)          # x2: double-buffered input tile
    rows = max(16, min(cap, rows))
    rows = (rows // 16) * 16                      # multiple of 16: safe for bf16 packing
    n_round = ((N + 15) // 16) * 16               # don't tile past (padded) N
    return int(max(16, min(rows, n_round)))


def weighted_cross_entropy(logits, labels, token_weights, *,
                           row_tile=None,
                           vmem_tile_budget_bytes=32 * 1024 * 1024,
                           vmem_limit_bytes=48 * 1024 * 1024):
    """logits [B,S,V] (f32 or bf16), labels [B,S] int, token_weights [V] -> scalar loss."""
    B, S, V = logits.shape
    N = B * S
    dtype_bytes = jnp.dtype(logits.dtype).itemsize

    if row_tile is None:
        row_tile = _choose_row_tile(N, V, dtype_bytes, vmem_tile_budget_bytes)

    num_tiles = -(-N // row_tile)
    N_pad = num_tiles * row_tile

    flat_logits = logits.reshape(N, V)                         # keep native dtype on HBM
    flat_labels = labels.reshape(N).astype(jnp.int32)

    # Fold weight lookup + ignore mask into one tiny per-row vector (XLA side).
    valid = flat_labels != IGNORE_INDEX
    safe_y = jnp.where(valid, jnp.clip(flat_labels, 0, V - 1), 0)
    w_rows = jnp.where(valid, token_weights.astype(jnp.float32)[safe_y], 0.0)

    if N_pad != N:
        pad = N_pad - N
        flat_logits = jnp.pad(flat_logits, ((0, pad), (0, 0)))
        flat_labels = jnp.pad(flat_labels, (0, pad), constant_values=IGNORE_INDEX)
        w_rows = jnp.pad(w_rows, (0, pad))                     # padded rows: weight 0

    labels_2d = flat_labels.reshape(N_pad, 1)
    w_rows_2d = w_rows.reshape(N_pad, 1)

    per_row_wnll = pl.pallas_call(
        _wce_kernel,
        out_shape=jax.ShapeDtypeStruct((N_pad, 1), jnp.float32),
        grid_spec=pltpu.PrefetchScalarGridSpec(
            num_scalar_prefetch=0,
            grid=(num_tiles,),
            in_specs=[
                pl.BlockSpec((row_tile, V), lambda i: (i, 0)),   # logits tile (native dtype)
                pl.BlockSpec((row_tile, 1), lambda i: (i, 0)),   # labels tile
                pl.BlockSpec((row_tile, 1), lambda i: (i, 0)),   # per-row weights
            ],
            out_specs=pl.BlockSpec((row_tile, 1), lambda i: (i, 0)),
        ),
        compiler_params=pltpu.CompilerParams(
            # independent row tiles -> megacore can split the grid on v7x
            dimension_semantics=("parallel",),
            vmem_limit_bytes=vmem_limit_bytes,
        ),
    )(flat_logits, labels_2d, w_rows_2d)

    # NaN if every label is ignored (sum of weights == 0) — matches PyTorch 'mean'.
    return jnp.sum(per_row_wnll) / jnp.sum(w_rows)


def _reference_loss(logits, labels, token_weights):
    """Pure-JAX reference matching torch.nn.CrossEntropyLoss(weight, ignore_index, 'mean')."""
    B, S, V = logits.shape
    x = logits.reshape(-1, V).astype(jnp.float32)
    y = labels.reshape(-1)
    valid = (y != IGNORE_INDEX)
    safe_y = jnp.where(valid, y, 0)
    lse = jax.nn.logsumexp(x, axis=-1)
    correct = jnp.take_along_axis(x, safe_y[:, None], axis=-1)[:, 0]
    w = token_weights[safe_y] * valid.astype(jnp.float32)
    return jnp.sum(w * (lse - correct)) / jnp.sum(w)


if __name__ == "__main__":
    # Small, forward-consistent shapes: batch=2, seq=8, vocab=32  ->  N=16 rows.
    B, S, V = 2, 8, 32
    key = jax.random.PRNGKey(0)
    k_logits, k_labels = jax.random.split(key)

    # bf16 logits: halves HBM traffic for this memory-bound kernel;
    # the kernel upcasts to f32 after the VMEM load.
    logits = jax.random.normal(k_logits, (B, S, V), dtype=jnp.float32).astype(jnp.bfloat16)
    labels = jax.random.randint(k_labels, (B, S), 0, V, dtype=jnp.int32)
    # a few ignored positions, like padding labels in the fine-tuning loop
    labels = labels.at[0, :2].set(IGNORE_INDEX)

    # Deterministic stand-in for the tokenizer in __init__:
    # tokenizer('ja') -> [3], tokenizer('nee') -> [7]   (synthetic token ids)
    class_weights = (2.0, 0.5)          # (weight for 'nee', weight for 'ja')
    ja_token_ids = [3]
    nee_token_ids = [7]
    token_weights = jnp.ones((V,), dtype=jnp.float32)
    for tid in ja_token_ids:
        token_weights = token_weights.at[tid].set(class_weights[1])
    for tid in nee_token_ids:
        token_weights = token_weights.at[tid].set(class_weights[0])

    loss = weighted_cross_entropy(logits, labels, token_weights)
    loss = jax.block_until_ready(loss)

    ref = _reference_loss(logits, labels, token_weights)
    assert jnp.allclose(loss, ref, rtol=1e-5, atol=1e-5), (loss, ref)

    print("KERNEL_OK")
</pallas_src>

<mosaic_0001>
module attributes {stable_mosaic.version = 11 : i64} {
  func.func @_wce_kernel(%arg0: i32, %arg1: memref<16x32xbf16, #tpu.memory_space<vmem>>, %arg2: memref<16x1xi32, #tpu.memory_space<vmem>>, %arg3: memref<16x1xf32, #tpu.memory_space<vmem>>, %arg4: memref<16x1xf32, #tpu.memory_space<vmem>>) attributes {dimension_semantics = [#tpu.dimension_semantics<parallel>], iteration_bounds = array<i64: 1>, scalar_prefetch = 0 : i64, scratch_operands = 0 : i64, tpu.core_type = #tpu.core_type<tc>, window_params = [{transform_indices = @transform_0, window_bounds = array<i64: 16, 32>}, {transform_indices = @transform_1, window_bounds = array<i64: 16, 1>}, {transform_indices = @transform_2, window_bounds = array<i64: 16, 1>}, {transform_indices = @transform_3, window_bounds = array<i64: 16, 1>}]} {
    %c0 = arith.constant 0 : index
    %c0_0 = arith.constant 0 : index
    %0 = vector.load %arg1[%c0, %c0_0] : memref<16x32xbf16, #tpu.memory_space<vmem>>, vector<16x32xbf16>
    %1 = arith.extf %0 : vector<16x32xbf16> to vector<16x32xf32>
    %c0_1 = arith.constant 0 : index
    %c0_2 = arith.constant 0 : index
    %2 = vector.load %arg2[%c0_1, %c0_2] : memref<16x1xi32, #tpu.memory_space<vmem>>, vector<16x1xi32>
    %3 = tpu.iota {dimensions = array<i32: 1>} : vector<16x32xi32>
    %4 = vector.broadcast %2 : vector<16x1xi32> to vector<16x32xi32>
    %5 = arith.cmpi eq, %3, %4 : vector<16x32xi32>
    %6 = arith.extui %5 : vector<16x32xi1> to vector<16x32xi32>
    %7 = arith.sitofp %6 : vector<16x32xi32> to vector<16x32xf32>
    %cst = arith.constant dense<0xFF800000> : vector<16xf32>
    %8 = vector.multi_reduction <maximumf>, %1, %cst [1] : vector<16x32xf32> to vector<16xf32>
    %9 = vector.shape_cast %8 : vector<16xf32> to vector<16x1xf32>
    %10 = vector.broadcast %9 : vector<16x1xf32> to vector<16x32xf32>
    %11 = arith.subf %1, %10 : vector<16x32xf32>
    %12 = math.exp %11 : vector<16x32xf32>
    %cst_3 = arith.constant dense<0.000000e+00> : vector<16xf32>
    %13 = vector.multi_reduction <add>, %12, %cst_3 [1] : vector<16x32xf32> to vector<16xf32>
    %14 = vector.shape_cast %13 : vector<16xf32> to vector<16x1xf32>
    %15 = math.log %14 : vector<16x1xf32>
    %16 = arith.addf %9, %15 : vector<16x1xf32>
    %17 = arith.mulf %1, %7 : vector<16x32xf32>
    %cst_4 = arith.constant dense<0.000000e+00> : vector<16xf32>
    %18 = vector.multi_reduction <add>, %17, %cst_4 [1] : vector<16x32xf32> to vector<16xf32>
    %19 = vector.shape_cast %18 : vector<16xf32> to vector<16x1xf32>
    %c0_5 = arith.constant 0 : index
    %c0_6 = arith.constant 0 : index
    %20 = vector.load %arg3[%c0_5, %c0_6] : memref<16x1xf32, #tpu.memory_space<vmem>>, vector<16x1xf32>
    %21 = arith.subf %16, %19 : vector<16x1xf32>
    %22 = arith.mulf %20, %21 : vector<16x1xf32>
    %c0_7 = arith.constant 0 : index
    %c0_8 = arith.constant 0 : index
    %23 = vector.load %arg4[%c0_7, %c0_8] : memref<16x1xf32, #tpu.memory_space<vmem>>, vector<16x1xf32>
    tpu.vector_store %arg4[%c0_7, %c0_8], %22 {strides = array<i32>} : memref<16x1xf32, #tpu.memory_space<vmem>>, vector<16x1xf32>,
    return
  }
  func.func @transform_0(%arg0: i32) -> (i32, i32) {
    %c0_i32 = arith.constant 0 : i32
    %c0_i32_0 = arith.constant 0 : i32
    return %arg0, %c0_i32 : i32, i32
  }
  func.func @transform_1(%arg0: i32) -> (i32, i32) {
    %c0_i32 = arith.constant 0 : i32
    %c0_i32_0 = arith.constant 0 : i32
    return %arg0, %c0_i32 : i32, i32
  }
  func.func @transform_2(%arg0: i32) -> (i32, i32) {
    %c0_i32 = arith.constant 0 : i32
    %c0_i32_0 = arith.constant 0 : i32
    return %arg0, %c0_i32 : i32, i32
  }
  func.func @transform_3(%arg0: i32) -> (i32, i32) {
    %c0_i32 = arith.constant 0 : i32
    %c0_i32_0 = arith.constant 0 : i32
    return %arg0, %c0_i32 : i32, i32
  }
}

</mosaic_0001>

<bundles_post_ra>
// kernel: tpu_custom_call.1
= control target key start
LH: loop header
LB: loop body
LE: loop exit
PB: predicated region body
PF: predicated region fallthrough
CT: control target
= control target key end

     0   :  { %vm34_vm0 = vcmask 261120   ;;  %v98_v1 = vmov 0   ;;  %v20_v9 = vlaneseq  ;;  %v99_v18 = vmov 0.0   ;;  %s147_s0 = inlined_call_operand.vmem [shape: bf16[16,32], index: 0, kind: input, shape index: {}]   ;;  %s148_s1 = inlined_call_operand.vmem [shape: s32[16,1], index: 1, kind: input, shape index: {}]   ;;  %s149_s2 = inlined_call_operand.vmem [shape: f32[16,1], index: 2, kind: input, shape index: {}]   ;;  %s150_s3 = inlined_call_operand.vmem [shape: f32[16,1], index: 3, kind: output, shape index: {}]  }
   0x1   :  { %v83_v0 = vld [vmem:[%s147_s0] sm:$0xff]   ;;  %88 = vset.pattern.permute.xlu1 %v98_v1  ;;  %89 = vset.pattern.permute.xlu0 %v98_v1  ;;  %v19_v5 = vld [vmem:[%s148_s1 + $0x8] sm:$0xff]  ;;  %vm73_vm3 = vcmask 7168  }
   0x2   :  { %v18_v2 = vld [vmem:[%s148_s1] sm:$0xff]  ;;  %v84_v3 = vunpack.c.l.bf16 %v83_v0  ;;  %v85_v4 = vunpack.c.h.bf16 %v83_v0  ;;  %v21_v14 = vand.u32 127, %v20_v9  ;;  %v68_v41 = vld [vmem:[%s149_s2 + $0x8] sm:$0xff] }
   0x3   :  { %23 = vperm.xlu1 %88, %v18_v2   ;;  %v67_v36 = vld [vmem:[%s149_s2] sm:$0xff] }
   0x4   :  { %v35_v6 = vsel %vm34_vm0, %v84_v3, -inf  ;;  %v38_v7 = vsel %vm34_vm0, %v85_v4, -inf }
   0x5   :  { %36 = vmax.xlane.f32.xlu0 %v35_v6 }
   0x7   :  { %26 = vperm.xlu1 %88, %v19_v5  }
   0x9   :  { %39 = vmax.xlane.f32.xlu0 %v38_v7 }
  0x82   :  { %v24_v12 = vpop.permute.xlu1 %23 }
  0x83   :  { %vm28_vm1 = vcmp.eq.s32.totalorder %v21_v14, %v24_v12 }
  0x84   :  { %v80_v19 = vsel %vm28_vm1, 1.0, %v99_v18 }
  0x85   :  { %v59_v20 = vmul.f32 %v84_v3, %v80_v19 }
  0x86   :  { %v27_v17 = vpop.permute.xlu1 %26 }
  0x87   :  { %vm29_vm2 = vcmp.eq.s32.totalorder %v21_v14, %v27_v17  ;;  %v61_v24 = vsel %vm34_vm0, %v59_v20, 0.0 }
  0x88   :  { %v81_v22 = vsel %vm29_vm2, 1.0, %v99_v18 }
  0x89   :  { %v60_v25 = vmul.f32 %v85_v4, %v81_v22 }
  0x8b   :  { %v64_v28 = vsel %vm34_vm0, %v60_v25, 0.0 }
  0x92   :  { %v37_v8 = vpop.xlane.xlu0 %36 }
  0x93   :  { %v41_v10 = vsub.f32 %v84_v3, %v37_v8 }
  0x95   :  { %v43_v11 = vmul.f32 1.442695, %v41_v10 }
  0x96   :  { %v40_v13 = vpop.xlane.xlu0 %39 }
  0x97   :  { %90 = vpow2.f32 %v43_v11  ;;  %v42_v15 = vsub.f32 %v85_v4, %v40_v13 }
  0x99   :  { %v45_v16 = vmul.f32 1.442695, %v42_v15 }
  0x9b   :  { %92 = vpow2.f32 %v45_v16 }
  0xa1   :  { %v91_v21 = vpop.eup %90 }
  0xa2   :  { %v47_v23 = vsel %vm34_vm0, %v91_v21, 0.0 }
  0xa3   :  { %48 = vadd.xlane.f32.xlu0 %v47_v23 }
  0xa5   :  { %v93_v26 = vpop.eup %92 }
  0xa6   :  { %v50_v27 = vsel %vm34_vm0, %v93_v26, 0.0 }
  0xa7   :  { %51 = vadd.xlane.f32.xlu1 %v50_v27  ;;  %62 = vadd.xlane.f32.xlu0 %v61_v24 }
  0xab   :  { %65 = vadd.xlane.f32.xlu0 %v64_v28 }
 0x130   :  { %v49_v29 = vpop.xlane.xlu0 %48 }
 0x131   :  { %94 = vlog2.f32 %v49_v29 }
 0x134   :  { %v52_v30 = vpop.xlane.xlu1 %51  ;;  %v63_v33 = vpop.xlane.xlu0 %62 }
 0x135   :  { %96 = vlog2.f32 %v52_v30 }
 0x138   :  { %v66_v42 = vpop.xlane.xlu0 %65 }
 0x13b   :  { %v95_v31 = vpop.eup %94 }
 0x13c   :  { %v54_v32 = vmul.f32 0.6931472, %v95_v31 }
 0x13e   :  { %v57_v34 = vadd.f32 %v54_v32, %v37_v8 }
 0x13f   :  { %v97_v35 = vpop.eup %96 }
 0x140   :  { %v56_v37 = vmul.f32 0.6931472, %v97_v35  ;;  %v69_v38 = vsub.f32 %v57_v34, %v63_v33 }
 0x142   :  { %v71_v39 = vmul.f32 %v69_v38, %v67_v36  ;;  %v58_v40 = vadd.f32 %v56_v37, %v40_v13 }
 0x144   :  { %74 = vst.msk [vmem:[%s150_s3] sm:$0xff] %vm73_vm3, %v71_v39  ;;  %v70_v43 = vsub.f32 %v58_v40, %v66_v42 }
 0x146   :  { %v72_v44 = vmul.f32 %v70_v43, %v68_v41 }
 0x148   :  { %75 = vst.msk [vmem:[%s150_s3 + $0x8] sm:$0xff] %vm73_vm3, %v72_v44 }

</bundles_post_ra>
